<compile_context>
chip_gen: v7x
topology: tpu7x:2x2x1
jax: 0.10.0
libtpu: 0.0.40
codegen_flags: <defaults>
</compile_context>

<pallas_src>
import functools

import jax
import jax.numpy as jnp
from jax import lax
from jax.experimental import pallas as pl
from jax.experimental.pallas import tpu as pltpu


_MAX_INFLIGHT_DMAS = 8


def _gather_copy_kernel(idx_ref, x_ref, o_ref, sem, *, nbuf):
    """Copy x[:, idx[k], :] -> o[:, k, :] for all k with direct HBM->HBM DMAs."""
    num_out = idx_ref.shape[0]  # K, static

    def dma(k, slot):
        # (B, 1, HW) strided slab of source channel idx[k] -> output channel k.
        return pltpu.make_async_copy(
            x_ref.at[:, pl.ds(idx_ref[k], 1), :],
            o_ref.at[:, pl.ds(k, 1), :],
            sem.at[slot],
        )

    # Prime the ring: launch the first `nbuf` channel copies (static unroll).
    for j in range(nbuf):
        dma(j, j).start()

    def body(k, carry):
        slot = k % nbuf
        dma(k, slot).wait()  # retire DMA k

        @pl.when(k + nbuf < num_out)
        def _():
            dma(k + nbuf, slot).start()  # refill this slot

        return carry

    lax.fori_loop(0, num_out, body, 0)


def feature_map_pruner(x, indices):
    """x: (B, C, H, W); indices: (K,) int channel ids -> (B, K, H, W)."""
    B, C, H, W = x.shape
    indices = jnp.asarray(indices, dtype=jnp.int32)
    K = indices.shape[0]
    hw = H * W

    if K == 0:
        return jnp.zeros((B, 0, H, W), dtype=x.dtype)

    # Free reshape (merges contiguous trailing dims): each channel plane is one
    # contiguous H*W run per batch element.
    x3 = x.reshape(B, C, hw)
    nbuf = min(_MAX_INFLIGHT_DMAS, K)
    itemsize = jnp.dtype(x.dtype).itemsize

    out3 = pl.pallas_call(
        functools.partial(_gather_copy_kernel, nbuf=nbuf),
        out_shape=jax.ShapeDtypeStruct((B, K, hw), x.dtype),
        grid_spec=pltpu.PrefetchScalarGridSpec(
            num_scalar_prefetch=1,                       # indices -> SMEM
            grid=(1,),                                   # DMA ring runs inside
            in_specs=[pl.BlockSpec(memory_space=pl.ANY)],  # x stays in HBM
            out_specs=pl.BlockSpec(memory_space=pl.ANY),   # out written via DMA
            scratch_shapes=[pltpu.SemaphoreType.DMA((nbuf,))],
        ),
        compiler_params=pltpu.CompilerParams(
            dimension_semantics=("arbitrary",),
        ),
        cost_estimate=pl.CostEstimate(
            flops=0,
            transcendentals=0,
            bytes_accessed=int(2 * B * K * hw * itemsize),
        ),
    )(indices, x3)

    return out3.reshape(B, K, H, W)


class FeatureMapPruner:
    """Mirror of the PyTorch module; indices default to arange(num_features)."""

    def __init__(self, num_features, indices=None):
        if indices is None:
            indices = jnp.arange(num_features, dtype=jnp.int32)
        self.indices = jnp.asarray(indices, dtype=jnp.int32)

    def __call__(self, x):
        return feature_map_pruner(x, self.indices)


if __name__ == "__main__":
    key = jax.random.PRNGKey(0)
    B, C, H, W = 2, 4, 16, 16
    x = jax.random.normal(key, (B, C, H, W), dtype=jnp.float32)

    # Deterministic, non-trivial pruning pattern (subset + permutation).
    indices = jnp.array([2, 0, 3], dtype=jnp.int32)

    pruner = FeatureMapPruner(num_features=C, indices=indices)
    out = jax.block_until_ready(pruner(x))

    # Reference check: plain JAX gather on the channel axis.
    ref = x[:, indices, :, :]
    assert out.shape == (B, indices.shape[0], H, W)
    assert jnp.array_equal(out, ref), "Pallas output mismatch vs reference gather"

    # Default-indices (identity) path.
    pruner_id = FeatureMapPruner(num_features=C)
    out_id = jax.block_until_ready(pruner_id(x))
    assert jnp.array_equal(out_id, x)

    print("KERNEL_OK")
</pallas_src>

<mosaic_0001>
module attributes {stable_mosaic.version = 11 : i64} {
  func.func @_gather_copy_kernel(%arg0: i32, %arg1: memref<3xi32, #tpu.memory_space<smem>>, %arg2: memref<2x4x256xf32, #tpu.memory_space<any>>, %arg3: memref<2x3x256xf32, #tpu.memory_space<any>>, %arg4: memref<3x!tpu.dma_semaphore, #tpu.memory_space<semaphore_mem>>) attributes {dimension_semantics = [#tpu.dimension_semantics<arbitrary>], iteration_bounds = array<i64: 1>, scalar_prefetch = 1 : i64, scratch_operands = 1 : i64, tpu.core_type = #tpu.core_type<tc>, window_params = [{}, {}]} {
    %c0 = arith.constant 0 : index
    %0 = memref.load %arg1[%c0] : memref<3xi32, #tpu.memory_space<smem>>
    %c0_i32 = arith.constant 0 : i32
    %c0_i32_0 = arith.constant 0 : i32
    %c0_i32_1 = arith.constant 0 : i32
    %1 = tpu.memref_slice %arg2[%c0_i32_0, %0, %c0_i32_1] : memref<2x4x256xf32, #tpu.memory_space<any>> -> memref<2x1x256xf32, #tpu.memory_space<any>>
    %c0_i32_2 = arith.constant 0 : i32
    %c0_i32_3 = arith.constant 0 : i32
    %c0_i32_4 = arith.constant 0 : i32
    %2 = tpu.memref_slice %arg3[%c0_i32_2, %c0_i32_3, %c0_i32_4] : memref<2x3x256xf32, #tpu.memory_space<any>> -> memref<2x1x256xf32, #tpu.memory_space<any>>
    %3 = tpu.memref_slice %arg4[%c0_i32] : memref<3x!tpu.dma_semaphore, #tpu.memory_space<semaphore_mem>> -> memref<1x!tpu.dma_semaphore, #tpu.memory_space<semaphore_mem>>
    %4 = tpu.memref_squeeze %3 : memref<1x!tpu.dma_semaphore, #tpu.memory_space<semaphore_mem>> -> memref<!tpu.dma_semaphore, #tpu.memory_space<semaphore_mem>>
    tpu.enqueue_dma source(%1 : memref<2x1x256xf32, #tpu.memory_space<any>>) target(%2 : memref<2x1x256xf32, #tpu.memory_space<any>>) target_semaphore(%4 : memref<!tpu.dma_semaphore, #tpu.memory_space<semaphore_mem>>)
    %c1 = arith.constant 1 : index
    %5 = memref.load %arg1[%c1] : memref<3xi32, #tpu.memory_space<smem>>
    %c1_i32 = arith.constant 1 : i32
    %c0_i32_5 = arith.constant 0 : i32
    %c0_i32_6 = arith.constant 0 : i32
    %6 = tpu.memref_slice %arg2[%c0_i32_5, %5, %c0_i32_6] : memref<2x4x256xf32, #tpu.memory_space<any>> -> memref<2x1x256xf32, #tpu.memory_space<any>>
    %c0_i32_7 = arith.constant 0 : i32
    %c1_i32_8 = arith.constant 1 : i32
    %c0_i32_9 = arith.constant 0 : i32
    %7 = tpu.memref_slice %arg3[%c0_i32_7, %c1_i32_8, %c0_i32_9] : memref<2x3x256xf32, #tpu.memory_space<any>> -> memref<2x1x256xf32, #tpu.memory_space<any>>
    %8 = tpu.memref_slice %arg4[%c1_i32] : memref<3x!tpu.dma_semaphore, #tpu.memory_space<semaphore_mem>> -> memref<1x!tpu.dma_semaphore, #tpu.memory_space<semaphore_mem>>
    %9 = tpu.memref_squeeze %8 : memref<1x!tpu.dma_semaphore, #tpu.memory_space<semaphore_mem>> -> memref<!tpu.dma_semaphore, #tpu.memory_space<semaphore_mem>>
    tpu.enqueue_dma source(%6 : memref<2x1x256xf32, #tpu.memory_space<any>>) target(%7 : memref<2x1x256xf32, #tpu.memory_space<any>>) target_semaphore(%9 : memref<!tpu.dma_semaphore, #tpu.memory_space<semaphore_mem>>)
    %c2 = arith.constant 2 : index
    %10 = memref.load %arg1[%c2] : memref<3xi32, #tpu.memory_space<smem>>
    %c2_i32 = arith.constant 2 : i32
    %c0_i32_10 = arith.constant 0 : i32
    %c0_i32_11 = arith.constant 0 : i32
    %11 = tpu.memref_slice %arg2[%c0_i32_10, %10, %c0_i32_11] : memref<2x4x256xf32, #tpu.memory_space<any>> -> memref<2x1x256xf32, #tpu.memory_space<any>>
    %c0_i32_12 = arith.constant 0 : i32
    %c2_i32_13 = arith.constant 2 : i32
    %c0_i32_14 = arith.constant 0 : i32
    %12 = tpu.memref_slice %arg3[%c0_i32_12, %c2_i32_13, %c0_i32_14] : memref<2x3x256xf32, #tpu.memory_space<any>> -> memref<2x1x256xf32, #tpu.memory_space<any>>
    %13 = tpu.memref_slice %arg4[%c2_i32] : memref<3x!tpu.dma_semaphore, #tpu.memory_space<semaphore_mem>> -> memref<1x!tpu.dma_semaphore, #tpu.memory_space<semaphore_mem>>
    %14 = tpu.memref_squeeze %13 : memref<1x!tpu.dma_semaphore, #tpu.memory_space<semaphore_mem>> -> memref<!tpu.dma_semaphore, #tpu.memory_space<semaphore_mem>>
    tpu.enqueue_dma source(%11 : memref<2x1x256xf32, #tpu.memory_space<any>>) target(%12 : memref<2x1x256xf32, #tpu.memory_space<any>>) target_semaphore(%14 : memref<!tpu.dma_semaphore, #tpu.memory_space<semaphore_mem>>)
    %c0_i32_15 = arith.constant 0 : i32
    %c3_i32 = arith.constant 3 : i32
    %15 = arith.addi %c0_i32_15, %c3_i32 : i32
    %c1_i32_16 = arith.constant 1 : i32
    scf.for %arg5 = %c0_i32_15 to %15 step %c1_i32_16  : i32 {
      %c3_i32_18 = arith.constant 3 : i32
      %c0_i32_19 = arith.constant 0 : i32
      %16 = arith.cmpi eq, %c3_i32_18, %c0_i32_19 : i32
      %c1_i32_20 = arith.constant 1 : i32
      %17 = arith.select %16, %c1_i32_20, %c3_i32_18 : i32
      %18 = arith.remsi %arg5, %17 : i32
      %c0_i32_21 = arith.constant 0 : i32
      %19 = arith.cmpi ne, %18, %c0_i32_21 : i32
      %c0_i32_22 = arith.constant 0 : i32
      %20 = arith.cmpi slt, %18, %c0_i32_22 : i32
      %c0_i32_23 = arith.constant 0 : i32
      %21 = arith.cmpi slt, %17, %c0_i32_23 : i32
      %22 = arith.xori %20, %21 : i1
      %23 = arith.andi %22, %19 : i1
      %24 = arith.addi %18, %17 : i32
      %25 = arith.select %23, %24, %18 : i32
      %26 = arith.index_cast %arg5 : i32 to index
      %27 = memref.load %arg1[%26] : memref<3xi32, #tpu.memory_space<smem>>
      %c0_i32_24 = arith.constant 0 : i32
      %c0_i32_25 = arith.constant 0 : i32
      %28 = tpu.memref_slice %arg2[%c0_i32_24, %27, %c0_i32_25] : memref<2x4x256xf32, #tpu.memory_space<any>> -> memref<2x1x256xf32, #tpu.memory_space<any>>
      %c0_i32_26 = arith.constant 0 : i32
      %c0_i32_27 = arith.constant 0 : i32
      %29 = tpu.memref_slice %arg3[%c0_i32_26, %arg5, %c0_i32_27] : memref<2x3x256xf32, #tpu.memory_space<any>> -> memref<2x1x256xf32, #tpu.memory_space<any>>
      %30 = tpu.memref_slice %arg4[%25] : memref<3x!tpu.dma_semaphore, #tpu.memory_space<semaphore_mem>> -> memref<1x!tpu.dma_semaphore, #tpu.memory_space<semaphore_mem>>
      %31 = tpu.memref_squeeze %30 : memref<1x!tpu.dma_semaphore, #tpu.memory_space<semaphore_mem>> -> memref<!tpu.dma_semaphore, #tpu.memory_space<semaphore_mem>>
      tpu.wait_dma2 semaphore(%31 : memref<!tpu.dma_semaphore, #tpu.memory_space<semaphore_mem>>) src(%28 : memref<2x1x256xf32, #tpu.memory_space<any>>) dst(%29 : memref<2x1x256xf32, #tpu.memory_space<any>>)
      %c3_i32_28 = arith.constant 3 : i32
      %32 = arith.addi %arg5, %c3_i32_28 : i32
      %c3_i32_29 = arith.constant 3 : i32
      %33 = arith.cmpi slt, %32, %c3_i32_29 : i32
      %34 = arith.extui %33 : i1 to i32
      %c0_i32_30 = arith.constant 0 : i32
      %35 = arith.cmpi ne, %34, %c0_i32_30 : i32
      scf.if %35 {
        %c3_i32_31 = arith.constant 3 : i32
        %36 = arith.addi %arg5, %c3_i32_31 : i32
        %37 = arith.index_cast %36 : i32 to index
        %38 = memref.load %arg1[%37] : memref<3xi32, #tpu.memory_space<smem>>
        %c0_i32_32 = arith.constant 0 : i32
        %c0_i32_33 = arith.constant 0 : i32
        %39 = tpu.memref_slice %arg2[%c0_i32_32, %38, %c0_i32_33] : memref<2x4x256xf32, #tpu.memory_space<any>> -> memref<2x1x256xf32, #tpu.memory_space<any>>
        %c0_i32_34 = arith.constant 0 : i32
        %c0_i32_35 = arith.constant 0 : i32
        %40 = tpu.memref_slice %arg3[%c0_i32_34, %36, %c0_i32_35] : memref<2x3x256xf32, #tpu.memory_space<any>> -> memref<2x1x256xf32, #tpu.memory_space<any>>
        %41 = tpu.memref_slice %arg4[%25] : memref<3x!tpu.dma_semaphore, #tpu.memory_space<semaphore_mem>> -> memref<1x!tpu.dma_semaphore, #tpu.memory_space<semaphore_mem>>
        %42 = tpu.memref_squeeze %41 : memref<1x!tpu.dma_semaphore, #tpu.memory_space<semaphore_mem>> -> memref<!tpu.dma_semaphore, #tpu.memory_space<semaphore_mem>>
        tpu.enqueue_dma source(%39 : memref<2x1x256xf32, #tpu.memory_space<any>>) target(%40 : memref<2x1x256xf32, #tpu.memory_space<any>>) target_semaphore(%42 : memref<!tpu.dma_semaphore, #tpu.memory_space<semaphore_mem>>)
      } else {
      }
    }
    %c3_i32_17 = arith.constant 3 : i32
    return
  }
}

</mosaic_0001>

<bundles_post_ra>
// kernel: tpu_custom_call.1
= control target key start
LH: loop header
LB: loop body
LE: loop exit
PB: predicated region body
PF: predicated region fallthrough
CT: control target
= control target key end

     0   :  { %s463_s0 = inlined_call_operand.hbm [shape: s32[3], index: 0, kind: input, shape index: {}]   ;;  %s464_s1 = inlined_call_operand.hbm [shape: f32[2,4,256], index: 1, kind: input, shape index: {}]   ;;  %s465_s2 = inlined_call_operand.vmem [shape: f32[2,3,256], index: 2, kind: output, shape index: {}]  }
   0x1   :  { %s182_s11 = scalar_lea.hbm %s463_s0, 16 }
   0x2   :  { %p183_p0 = scmp.ne.s32.totalorder %s463_s0, %s182_s11  ;;  %p186_p1 = scmp.lt.u32.totalorder %s182_s11, %s463_s0 }
   0x4   :  { %p188_p2 = pnand %p186_p1, %p183_p0 }
   0x6   :  { %191 = shalt.err (!%p188_p2)  }
   0x7   :  { %s304_s16 = smov [#allocation4]  }
   0x8   :  { %8 = dma.hbm_to_smem %s463_s0, 16, %s304_s16, [#allocation3] }
   0x9   :  { %296 = dma.done.wait [#allocation3], 16 }
   0xa   :  { %297 = vsyncadd [#allocation3], 4294967280 }
   0xb   :  { %10 = sfence }
   0xc   :  { %s11_s19 = sld [smem:[#allocation4]]  ;;  %s19_s22 = sshll.u32 %s465_s2, 4  ;;  %s339_s22 = int_to_ptr.vmem [resolvable:$true] %s19_s22 }
   0xd   :  { %s341_s23 = sld [smem:[#allocation4 + $0x1]]  ;;  %s30_s26 = scalar_lea.vmem %s465_s2, 1 }
   0xe   :  { %s346_s27 = sld [smem:[#allocation4 + $0x2]]  ;;  %s33_s0 = sshll.u32 %s30_s26, 4  ;;  %s351_s0 = int_to_ptr.vmem [resolvable:$true] %s33_s0 }
   0xf   :  { %s44_s30 = scalar_lea.vmem %s465_s2, 2  ;;  %s363_s18 = scalar_lea.hbm %s464_s1, 256 }
  0x10   :  { %s353_s6 = sshll.u32 %s44_s30, 4  ;;  %s48_s6 = int_to_ptr.vmem [resolvable:$true] %s353_s6 }
  0x12   :  { %s12_s3 = sshrl.u32 %s11_s19, 2  ;;  %s13_s4 = sand.u32 3, %s11_s19  }
  0x13   :  { %s143_s5 = sshll.u32 %s12_s3, 3  ;;  %s24_s8 = sshrl.u32 %s341_s23, 2 }
  0x14   :  { %s15_s7 = sadd.s32 %s143_s5, %s13_s4  ;;  %s25_s10 = sand.u32 3, %s341_s23  }
  0x15   :  { %s144_s9 = sshll.u32 %s15_s7, 4  ;;  %s146_s14 = sshll.u32 %s24_s8, 3 }
  0x16   :  { %s17_s13 = scalar_lea.hbm %s464_s1, %s144_s9 }
  0x17   :  { %s192_s15 = scalar_lea.hbm %s17_s13, 64  ;;  %p195_p4 = scmp.lt.u32.totalorder %s17_s13, %s464_s1 }
  0x18   :  { %p193_p3 = scmp.ne.s32.totalorder %s17_s13, %s192_s15  ;;  %p196_p5 = scmp.lt.u32.totalorder %s363_s18, %s192_s15 }
  0x19   :  { %p198_p7 = scmp.lt.u32.totalorder %s192_s15, %s17_s13 }
  0x1a   :  { %p197_p6 = por %p196_p5, %p195_p4 }
  0x1c   :  { %p199_p8 = por %p198_p7, %p197_p6 }
  0x1e   :  { %p200_p9 = pnand %p199_p8, %p193_p3 }
  0x20   :  { %203 = shalt.err (!%p200_p9)  }
  0x21   :  { %s204_s21 = scalar_lea.vmem %s339_s22, 64  ;;  %s372_s23 = scalar_lea.vmem %s339_s22, 256 }
  0x22   :  { %p205_p10 = scmp.ne.s32.totalorder %s339_s22, %s204_s21  ;;  %p209_p11 = scmp.lt.s32.totalorder %s339_s22, %s339_s22 }
  0x23   :  { %p210_p12 = scmp.lt.s32.totalorder %s372_s23, %s204_s21 }
  0x25   :  { %p211_p13 = por %p210_p12, %p209_p11 }
  0x27   :  { %p212_p0 = pnand %p211_p13, %p205_p10 }
  0x29   :  { %215 = shalt.err (!%p212_p0)  }
  0x2a   :  { %s305_s24 = smov 64   ;;  %s306_s25 = smov 1  }
  0x2b   :  { %22 = dma.hbm_to_vmem [thread:$0]  %s17_s13, 64, %s339_s22, [#allocation2], %s305_s24, %s305_s24, %s306_s25 }
  0x2c   :  { %s27_s26 = sadd.s32 %s146_s14, %s25_s10  ;;  %s38_s28 = sshrl.u32 %s346_s27, 2 }
  0x2d   :  { %s147_s29 = sshll.u32 %s27_s26, 4  ;;  %s39_s30 = sand.u32 3, %s346_s27  }
  0x2e   :  { %s29_s5 = scalar_lea.hbm %s464_s1, %s147_s29  ;;  %s149_s7 = sshll.u32 %s38_s28, 3 }
  0x2f   :  { %s216_s8 = scalar_lea.hbm %s29_s5, 64  ;;  %p219_p2 = scmp.lt.u32.totalorder %s29_s5, %s464_s1 }
  0x30   :  { %p217_p1 = scmp.ne.s32.totalorder %s29_s5, %s216_s8  ;;  %p220_p3 = scmp.lt.u32.totalorder %s363_s18, %s216_s8 }
  0x31   :  { %p222_p5 = scmp.lt.u32.totalorder %s216_s8, %s29_s5 }
  0x32   :  { %p221_p4 = por %p220_p3, %p219_p2 }
  0x34   :  { %p223_p6 = por %p222_p5, %p221_p4 }
  0x36   :  { %p224_p7 = pnand %p223_p6, %p217_p1 }
  0x38   :  { %227 = shalt.err (!%p224_p7)  }
  0x39   :  { %s228_s27 = scalar_lea.vmem %s351_s0, 64  ;;  %p233_p9 = scmp.lt.s32.totalorder %s351_s0, %s339_s22 }
  0x3a   :  { %p229_p8 = scmp.ne.s32.totalorder %s351_s0, %s228_s27  ;;  %p234_p10 = scmp.lt.s32.totalorder %s372_s23, %s228_s27 }
  0x3c   :  { %p235_p11 = por %p234_p10, %p233_p9 }
  0x3e   :  { %p236_p12 = pnand %p235_p11, %p229_p8 }
  0x40   :  { %239 = shalt.err (!%p236_p12)  }
  0x41   :  { %36 = dma.hbm_to_vmem [thread:$0]  %s29_s5, 64, %s351_s0, [#allocation2 + $0x1], %s305_s24, %s305_s24, %s306_s25 }
  0x42   :  { %s41_s10 = sadd.s32 %s149_s7, %s39_s30 }
  0x43   :  { %s150_s12 = sshll.u32 %s41_s10, 4 }
  0x44   :  { %s43_s15 = scalar_lea.hbm %s464_s1, %s150_s12 }
  0x45   :  { %s240_s16 = scalar_lea.hbm %s43_s15, 64  ;;  %p243_p0 = scmp.lt.u32.totalorder %s43_s15, %s464_s1 }
  0x46   :  { %p241_p13 = scmp.ne.s32.totalorder %s43_s15, %s240_s16  ;;  %p244_p1 = scmp.lt.u32.totalorder %s363_s18, %s240_s16 }
  0x47   :  { %p246_p3 = scmp.lt.u32.totalorder %s240_s16, %s43_s15 }
  0x48   :  { %p245_p2 = por %p244_p1, %p243_p0 }
  0x4a   :  { %p247_p4 = por %p246_p3, %p245_p2 }
  0x4c   :  { %p248_p5 = pnand %p247_p4, %p241_p13 }
  0x4e   :  { %251 = shalt.err (!%p248_p5)  }
  0x4f   :  { %s252_s0 = scalar_lea.vmem %s48_s6, 64  ;;  %p257_p7 = scmp.lt.s32.totalorder %s48_s6, %s339_s22 }
  0x50   :  { %p253_p6 = scmp.ne.s32.totalorder %s48_s6, %s252_s0  ;;  %p258_p8 = scmp.lt.s32.totalorder %s372_s23, %s252_s0 }
  0x52   :  { %p259_p9 = por %p258_p8, %p257_p7 }
  0x54   :  { %p260_p10 = pnand %p259_p9, %p253_p6 }
  0x56   :  { %263 = shalt.err (!%p260_p10)  }
  0x57   :  { %50 = dma.hbm_to_vmem [thread:$0]  %s43_s15, 64, %s48_s6, [#allocation2 + $0x2], %s305_s24, %s305_s24, %s306_s25 }
  0x58   :  { %s412_s20 = smov 0  }
  0x59 LB: > { %s58_s21 = ssub.s32 0, %s302_s20  ;;  %p57_p11 = scmp.lt.s32.totalorder %s302_s20, 0  ;;  %s302_s20 = sphi %s412_s20, %s56_s20  }
  0x5a   : > { %s151_s26 = smin.u32 %s302_s20, %s58_s21 }
  0x5b   : > { %180 = sdivrem.u32 %s151_s26, 3 }
  0x64   : > { %s181_s28 = spop.drf %180 }
  0x65   : > { %s62_s29 = ssub.s32 0, %s181_s28 }
  0x66   : > { %s467_s29 = smov (!%p57_p11, %s62_s29), %s181_s28 }
  0x67   : > { %p153_p12 = scmp.lt.s32.totalorder %s467_s29, 0  ;;  %s68_s30 = sadd.s32 3, %s467_s29 }
  0x69   : > { %s469_s30 = smov (!%p153_p12, %s68_s30), %s467_s29 }
  0x6a   : > { %s420_s6 = scalar_lea.sflag [#allocation2], %s469_s30 }
  0x6b   : > { %298 = dma.done.wait %s420_s6, 64 }
  0x6c   : > { %299 = vsyncadd %s420_s6, 4294967232  ;;  %s425_s24 = sadd.s32 3, %s302_s20 }
  0x6d   : > { %p165_p13 = scmp.lt.s32.totalorder %s425_s24, 3  ;;  %s88_s25 = sshrl.u32 %s425_s24, 2 }
  0x6e   : > { %s89_s3 = sand.u32 3, %s425_s24   ;;  %s157_s7 = sshll.u32 %s88_s25, 3 }
  0x6f   : > { %s162_s4 = scalar_select %p165_p13, [#allocation4], [#allocation9] }
  0x70   : > { %s163_s5 = scalar_select %p165_p13, %s425_s24, 0 }
  0x71   : > { %s91_s9 = sadd.s32 %s157_s7, %s89_s3 }
  0x72   : > { %s81_s8 = sld [smem:[%s162_s4 + %s163_s5]]  ;;  %s92_s10 = scalar_lea.vmem %s465_s2, %s91_s9 }
  0x73   : > { %s94_s12 = sshll.u32 %s92_s10, 4  ;;  %s438_s12 = int_to_ptr.vmem [resolvable:$true] %s94_s12 }
  0x78   : > { %s82_s13 = sshrl.u32 %s81_s8, 2  ;;  %s83_s14 = sand.u32 3, %s81_s8  }
  0x79   : > { %s155_s15 = sshll.u32 %s82_s13, 3 }
  0x7a   : > { %s85_s16 = sadd.s32 %s155_s15, %s83_s14 }
  0x7b   : > { %s156_s17 = sshll.u32 %s85_s16, 4 }
  0x7c   : > { %s87_s21 = scalar_lea.hbm %s464_s1, %s156_s17 }
  0x7d   : > { %s264_s26 = scalar_lea.hbm %s87_s21, 64  ;;  %p269_p3 = scmp.lt.u32.totalorder %s87_s21, %s464_s1 }
  0x7e   : > { %p265_p0 = scmp.ne.s32.totalorder %s87_s21, %s264_s26  ;;  %p270_p4 = scmp.lt.u32.totalorder %s363_s18, %s264_s26 }
  0x7f   : > { %p272_p6 = scmp.lt.u32.totalorder %s264_s26, %s87_s21 }
  0x80   : > { %p266_p1 = pnand %p265_p0, %p165_p13  ;;  %p271_p5 = por %p270_p4, %p269_p3 }
  0x82   : > { %p267_p2 = pneg %p266_p1  ;;  %p273_p7 = por %p272_p6, %p271_p5 }
  0x84   : > { %p274_p8 = pnand %p273_p7, %p267_p2 }
  0x86   : > { %277 = shalt.err (!%p274_p8)  }
  0x87   : > { %s278_s30 = scalar_lea.vmem %s438_s12, 64  ;;  %p285_p12 = scmp.lt.s32.totalorder %s438_s12, %s339_s22 }
  0x88   : > { %p279_p9 = scmp.ne.s32.totalorder %s438_s12, %s278_s30  ;;  %p286_p0 = scmp.lt.s32.totalorder %s372_s23, %s278_s30 }
  0x8a   : > { %p280_p10 = pnand %p279_p9, %p165_p13  ;;  %p287_p1 = por %p286_p0, %p285_p12 }
  0x8c   : > { %p281_p11 = pneg %p280_p10 }
  0x8e   : > { %p288_p3 = pnand %p287_p1, %p281_p11 }
  0x90   : > { %291 = shalt.err (!%p288_p3)  }
  0x91   : > { %s307_s25 = smov 64   ;;  %s308_s3 = smov 1  }
  0x92   : > { %164 = dma.hbm_to_vmem [thread:$0]  (%p165_p13), %s87_s21, 64, %s438_s12, %s420_s6, %s307_s25, %s307_s25, %s308_s3 }
  0x93   : > { %s56_s20 = sadd.s32 1, %s302_s20  }
  0x94   : > { %p53_p2 = scmp.ge.s32.totalorder %s56_s20, 3  }
  0x96   :  { %55 = sbr.rel (!%p53_p2) target bundleno = 89 (0x59), region = 35 }
  0x9d   :  { %98 = vsyncmov [#allocation2] }
  0xa0   :  { %s99_s4 = vpop.sfrf %98 }
  0xa1   :  { %p158_p4 = scmp.ne.s32.totalorder %s99_s4, 0 }
  0xa3   :  { %103 = shalt.err (%p158_p4)  }
  0xa4   :  { %105 = vsyncmov [#allocation2 + $0x1] }
  0xa7   :  { %s106_s5 = vpop.sfrf %105 }
  0xa8   :  { %p159_p5 = scmp.ne.s32.totalorder %s106_s5, 0 }
  0xaa   :  { %110 = shalt.err (%p159_p5)  }
  0xab   :  { %112 = vsyncmov [#allocation2 + $0x2] }
  0xae   :  { %s113_s7 = vpop.sfrf %112 }
  0xaf   :  { %p160_p6 = scmp.ne.s32.totalorder %s113_s7, 0 }
  0xb1   :  { %117 = shalt.err (%p160_p6)  }

</bundles_post_ra>
